<compile_context>
chip_gen: v7x
topology: tpu7x:2x2x1
jax: 0.10.0
libtpu: 0.0.40
codegen_flags: <defaults>
</compile_context>

<pallas_src>
import math
import jax
import jax.numpy as jnp
from jax.experimental import pallas as pl
from jax.experimental.pallas import tpu as pltpu


def _pe_kernel(x_ref, w2_ref, pe_ref, o_ref):
    # x_ref : (TM, PF)  packed rows of x
    # w2_ref: (PF, PF)  block-diagonal W^T, resident across all grid steps
    # pe_ref: (TM, PF)  pe (+bias), pre-packed to the identical row layout
    # o_ref : (TM, PF)
    y = jnp.dot(x_ref[...], w2_ref[...], preferred_element_type=jnp.float32)
    o_ref[...] = (y + pe_ref[...]).astype(o_ref.dtype)


def make_sinusoidal_pe(feature_maps_size: int, embedding_dim: int) -> jnp.ndarray:
    """Replicates the PyTorch buffer: shape (feature_maps_size, 1, embedding_dim)."""
    position = jnp.arange(0, feature_maps_size, dtype=jnp.float32)[:, None]
    div_term = jnp.exp(
        jnp.arange(0, embedding_dim, 2, dtype=jnp.float32)
        * (-math.log(10000.0) / embedding_dim)
    )
    angles = position * div_term  # (F, E//2)
    pe = jnp.zeros((feature_maps_size, embedding_dim), dtype=jnp.float32)
    pe = pe.at[:, 0::2].set(jnp.sin(angles))
    pe = pe.at[:, 1::2].set(jnp.cos(angles))
    # unsqueeze(0).transpose(0, 1) -> (F, 1, E)
    return pe[:, None, :]


def _pick_pack_factor(total_rows: int, F: int, itemsize: int,
                      max_weight_bytes: int = 4 * 1024 * 1024) -> int:
    """Smallest P with P | total_rows and (P*F) % 128 == 0 whose block-diagonal
    weight stays small enough to live resident in VMEM.  Falls back to 1
    (masked-store path) if no such P exists."""
    if F % 128 == 0:
        return 1
    for p in range(2, total_rows + 1):
        if total_rows % p:
            continue
        pf = p * F
        if pf % 128:
            continue
        if pf * pf * itemsize > max_weight_bytes:
            break
        return p
    return 1


def _pick_row_tile(n_rows: int, pf: int, itemsize: int,
                   vmem_budget_bytes: int = 20 * 1024 * 1024) -> int:
    """Packed rows per grid step.  Budget covers the double-buffered x / pe /
    out streams (pe is f32); the resident weight and compiler scratch get the
    remaining headroom under the 32 MiB scoped limit (valid on v5e/v6e/v7x)."""
    sub = {4: 8, 2: 16, 1: 32}.get(itemsize, 8)     # dtype-dependent sublane pack
    bytes_per_row = pf * (2 * itemsize + 2 * 4 + 2 * itemsize)  # x + pe(f32) + out, 2x buffered
    tm = max(sub, vmem_budget_bytes // max(1, bytes_per_row))
    # Prefer >= 2 grid steps so "parallel" can shard across v7x's 2 TensorCores
    # (costs nothing on single-TC v5e/v6e).
    half = -(-n_rows // 2)
    tm = min(tm, max(half, sub))
    if tm >= n_rows:
        return n_rows                               # full extent -> always legal
    return max(sub, (tm // sub) * sub)


def positional_encoding_forward(x, w, b, pe):
    """x: (S, B, F); w: (F, F) Linear weight; b: (F,); pe: (F_ms, 1, E), E == F."""
    S, B, F = x.shape
    F_ms, _, E = pe.shape
    assert E == F, "embedding_dim must equal feature_maps_size for the broadcast add"
    assert S <= F_ms, "sequence length must be <= feature_maps_size (pe[:S] slice)"
    assert w.shape == (F, F) and b.shape == (F,)

    dtype = x.dtype
    itemsize = jnp.dtype(dtype).itemsize
    total_rows = S * B

    # --- lane packing ------------------------------------------------------
    P = _pick_pack_factor(total_rows, F, itemsize)
    PF = P * F
    n_rows = total_rows // P

    x_packed = x.reshape(n_rows, PF)                       # metadata-only reshape
    wt = w.T.astype(dtype)                                 # Linear computes x @ W^T
    # Block-diagonal weight so each packed sub-row is projected independently.
    w2 = jnp.kron(jnp.eye(P, dtype=dtype), wt) if P > 1 else wt   # (PF, PF)

    # Fold the bias into pe once, broadcast over batch, and pack to the exact
    # row layout of x_packed -> the kernel add is purely elementwise (no
    # in-kernel broadcast/reshape).  Kept in f32 for accuracy.
    pe_plus_b = pe[:S, 0, :].astype(jnp.float32) + b.astype(jnp.float32)[None, :]  # (S, F)
    pe_packed = jnp.broadcast_to(pe_plus_b[:, None, :], (S, B, F)).reshape(n_rows, PF)

    # --- tiling ------------------------------------------------------------
    TM = _pick_row_tile(n_rows, PF, itemsize)
    grid = (pl.cdiv(n_rows, TM),)

    cost = pl.CostEstimate(
        flops=2 * n_rows * PF * PF,                 # MXU work incl. block-diag zeros
        transcendentals=0,
        bytes_accessed=(2 * n_rows * PF + PF * PF) * itemsize + n_rows * PF * 4,
    )

    out_packed = pl.pallas_call(
        _pe_kernel,
        out_shape=jax.ShapeDtypeStruct((n_rows, PF), dtype),
        grid_spec=pltpu.PrefetchScalarGridSpec(
            num_scalar_prefetch=0,
            grid=grid,
            in_specs=[
                pl.BlockSpec((TM, PF), lambda i: (i, 0)),   # x rows, pipelined
                pl.BlockSpec((PF, PF), lambda i: (0, 0)),   # block-diag W^T, resident
                pl.BlockSpec((TM, PF), lambda i: (i, 0)),   # packed pe (+bias)
            ],
            out_specs=pl.BlockSpec((TM, PF), lambda i: (i, 0)),
        ),
        compiler_params=pltpu.CompilerParams(
            # Independent row tiles -> shard across TensorCores on v7x.
            dimension_semantics=("parallel",),
            # Blocks are budgeted at ~20 MiB total (double-buffered) + <=4 MiB
            # resident weight, so 32 MiB scoped VMEM holds on v5e/v6e/v7x.
            vmem_limit_bytes=32 * 1024 * 1024,
        ),
        cost_estimate=cost,
    )(x_packed, w2, pe_packed)

    return out_packed.reshape(S, B, F)


if __name__ == "__main__":
    # Small shapes consistent with the module's forward:
    #   feature_maps_size = embedding_dim = 64 (module default), seq = 8, batch = 2.
    embedding_dim = 64
    feature_maps_size = 64
    S, B, F = 8, 2, feature_maps_size

    key = jax.random.PRNGKey(0)
    kx, kw, kb = jax.random.split(key, 3)

    x = jax.random.normal(kx, (S, B, F), dtype=jnp.float32)

    # Deterministic nn.Linear-style init (uniform in +/- 1/sqrt(F)).
    bound = 1.0 / math.sqrt(F)
    w = jax.random.uniform(kw, (F, F), minval=-bound, maxval=bound, dtype=jnp.float32)
    b = jax.random.uniform(kb, (F,), minval=-bound, maxval=bound, dtype=jnp.float32)

    pe = make_sinusoidal_pe(feature_maps_size, embedding_dim)

    fwd = jax.jit(positional_encoding_forward)
    out = fwd(x, w, b, pe)
    jax.block_until_ready(out)

    # Reference check in plain JAX (same math as the PyTorch forward).
    ref = jnp.einsum("sbf,gf->sbg", x, w) + b[None, None, :] + pe[:S]
    assert out.shape == (S, B, F)
    assert jnp.allclose(out, ref, atol=1e-5, rtol=1e-5)

    print("KERNEL_OK")
</pallas_src>

<mosaic_0001>
module attributes {stable_mosaic.version = 11 : i64} {
  func.func @_pe_kernel(%arg0: i32, %arg1: memref<8x128xf32, #tpu.memory_space<vmem>>, %arg2: memref<128x128xf32, #tpu.memory_space<vmem>>, %arg3: memref<8x128xf32, #tpu.memory_space<vmem>>, %arg4: memref<8x128xf32, #tpu.memory_space<vmem>>) attributes {dimension_semantics = [#tpu.dimension_semantics<parallel>], iteration_bounds = array<i64: 1>, scalar_prefetch = 0 : i64, scratch_operands = 0 : i64, tpu.core_type = #tpu.core_type<tc>, window_params = [{transform_indices = @transform_0, window_bounds = array<i64: 8, 128>}, {pipeline_mode = #tpu.pipeline_mode<synchronous>, transform_indices = @transform_1, window_bounds = array<i64: 128, 128>}, {transform_indices = @transform_2, window_bounds = array<i64: 8, 128>}, {transform_indices = @transform_3, window_bounds = array<i64: 8, 128>}]} {
    %c0 = arith.constant 0 : index
    %c0_0 = arith.constant 0 : index
    %0 = vector.load %arg1[%c0, %c0_0] : memref<8x128xf32, #tpu.memory_space<vmem>>, vector<8x128xf32>
    %c0_1 = arith.constant 0 : index
    %c0_2 = arith.constant 0 : index
    %1 = vector.load %arg2[%c0_1, %c0_2] : memref<128x128xf32, #tpu.memory_space<vmem>>, vector<128x128xf32>
    %cst = arith.constant dense<0.000000e+00> : vector<8x128xf32>
    %2 = tpu.matmul %0, %1, %cst {dimension_numbers = #tpu.dot_dimension_numbers<[1], [0], [0], [1], [0, 0, 1, 1], [], []>} : vector<8x128xf32>, vector<128x128xf32>, vector<8x128xf32> -> vector<8x128xf32>
    %c0_3 = arith.constant 0 : index
    %c0_4 = arith.constant 0 : index
    %3 = vector.load %arg3[%c0_3, %c0_4] : memref<8x128xf32, #tpu.memory_space<vmem>>, vector<8x128xf32>
    %4 = arith.addf %2, %3 : vector<8x128xf32>
    %c0_5 = arith.constant 0 : index
    %c0_6 = arith.constant 0 : index
    %5 = vector.load %arg4[%c0_5, %c0_6] : memref<8x128xf32, #tpu.memory_space<vmem>>, vector<8x128xf32>
    tpu.vector_store %arg4[%c0_5, %c0_6], %4 {strides = array<i32>} : memref<8x128xf32, #tpu.memory_space<vmem>>, vector<8x128xf32>,
    return
  }
  func.func @transform_0(%arg0: i32) -> (i32, i32) {
    %c0_i32 = arith.constant 0 : i32
    %c0_i32_0 = arith.constant 0 : i32
    return %arg0, %c0_i32 : i32, i32
  }
  func.func @transform_1(%arg0: i32) -> (i32, i32) {
    %c0_i32 = arith.constant 0 : i32
    %c0_i32_0 = arith.constant 0 : i32
    %c0_i32_1 = arith.constant 0 : i32
    return %c0_i32, %c0_i32_0 : i32, i32
  }
  func.func @transform_2(%arg0: i32) -> (i32, i32) {
    %c0_i32 = arith.constant 0 : i32
    %c0_i32_0 = arith.constant 0 : i32
    return %arg0, %c0_i32 : i32, i32
  }
  func.func @transform_3(%arg0: i32) -> (i32, i32) {
    %c0_i32 = arith.constant 0 : i32
    %c0_i32_0 = arith.constant 0 : i32
    return %arg0, %c0_i32 : i32, i32
  }
}

</mosaic_0001>

<bundles_post_ra>
// kernel: positional_encoding_forward.1
= control target key start
LH: loop header
LB: loop body
LE: loop exit
PB: predicated region body
PF: predicated region fallthrough
CT: control target
= control target key end

     0   :  { %v186_v0 = vmov 0.0|0.0   ;;  %vm187_vm0 = vmmov 0   ;;  %v188_v4 = vmov 0.0   ;;  %s266_s1 = inlined_call_operand.vmem [shape: f32[128,128], index: 1, kind: input, shape index: {}]   ;;  %s267_s0 = inlined_call_operand.vmem [shape: f32[8,128], index: 0, kind: input, shape index: {}]   ;;  %s268_s2 = inlined_call_operand.vmem [shape: f32[8,128], index: 2, kind: input, shape index: {}]   ;;  %s269_s3 = inlined_call_operand.vmem [shape: f32[8,128], index: 3, kind: output, shape index: {}]  }
   0x1   :  { %159 = vmatprep.subr.bf16.mxu0 %v186_v0  ;;  %v15_v1 = vld [vmem:[%s266_s1] sm:$0xff]  ;;  %v16_v2 = vld [vmem:[%s266_s1 + $0x8] sm:$0xff]  ;;  %v17_v3 = vld [vmem:[%s266_s1 + $0x10] sm:$0xff]  ;;  %156 = vmatprep.mubr.msk.f32.mxu0 %vm187_vm0, %v188_v4 }
   0x2   :  { %v160_v5 = vpack.c.bf16 %v16_v2, %v15_v1  ;;  %v18_v6 = vld [vmem:[%s266_s1 + $0x18] sm:$0xff]  ;;  %v19_v8 = vld [vmem:[%s266_s1 + $0x20] sm:$0xff]  ;;  %v20_v9 = vld [vmem:[%s266_s1 + $0x28] sm:$0xff] }
   0x3   :  { %v163_v7 = vpack.c.bf16 %v18_v6, %v17_v3  ;;  %v166_v10 = vpack.c.bf16 %v20_v9, %v19_v8  ;;  %v21_v11 = vld [vmem:[%s266_s1 + $0x30] sm:$0xff]  ;;  %v22_v12 = vld [vmem:[%s266_s1 + $0x38] sm:$0xff]  ;;  %v23_v14 = vld [vmem:[%s266_s1 + $0x40] sm:$0xff] }
   0x4   :  { %161 = vmatpush3.bf16.msra.mxu0 %v160_v5  ;;  %v169_v13 = vpack.c.bf16 %v22_v12, %v21_v11  ;;  %v24_v15 = vld [vmem:[%s266_s1 + $0x48] sm:$0xff]  ;;  %v25_v17 = vld [vmem:[%s266_s1 + $0x50] sm:$0xff]  ;;  %v26_v18 = vld [vmem:[%s266_s1 + $0x58] sm:$0xff] }
   0x5   :  { %162 = vmatprep.subr.bf16.mxu0 %v186_v0  ;;  %v172_v16 = vpack.c.bf16 %v24_v15, %v23_v14  ;;  %v175_v19 = vpack.c.bf16 %v26_v18, %v25_v17  ;;  %v27_v20 = vld [vmem:[%s266_s1 + $0x60] sm:$0xff]  ;;  %v28_v21 = vld [vmem:[%s266_s1 + $0x68] sm:$0xff]  ;;  %v29_v23 = vld [vmem:[%s266_s1 + $0x70] sm:$0xff] }
   0x6   :  { %v178_v22 = vpack.c.bf16 %v28_v21, %v27_v20  ;;  %v30_v24 = vld [vmem:[%s266_s1 + $0x78] sm:$0xff]  ;;  %v14_v26 = vld [vmem:[%s267_s0] sm:$0xff] }
   0x7   :  { %v181_v25 = vpack.c.bf16 %v30_v24, %v29_v23  ;;  %v31_v27 = vld [vmem:[%s268_s2] sm:$0xff] }
   0x8   :  { %164 = vmatpush3.bf16.msra.mxu0 %v163_v7 }
   0x9   :  { %165 = vmatprep.subr.bf16.mxu0 %v186_v0 }
   0xc   :  { %167 = vmatpush3.bf16.msra.mxu0 %v166_v10 }
   0xd   :  { %168 = vmatprep.subr.bf16.mxu0 %v186_v0 }
  0x10   :  { %170 = vmatpush3.bf16.msra.mxu0 %v169_v13 }
  0x11   :  { %171 = vmatprep.subr.bf16.mxu0 %v186_v0 }
  0x14   :  { %173 = vmatpush3.bf16.msra.mxu0 %v172_v16 }
  0x15   :  { %174 = vmatprep.subr.bf16.mxu0 %v186_v0 }
  0x18   :  { %176 = vmatpush3.bf16.msra.mxu0 %v175_v19 }
  0x19   :  { %177 = vmatprep.subr.bf16.mxu0 %v186_v0 }
  0x1c   :  { %179 = vmatpush3.bf16.msra.mxu0 %v178_v22 }
  0x1d   :  { %180 = vmatprep.subr.bf16.mxu0 %v186_v0 }
  0x20   :  { %182 = vmatpush3.bf16.msra.mxu0 %v181_v25 }
  0x23   :  { %157 = vmatmul.mubr.f32.vlgmr.msra.gmra.mrb[0].mxu0 %v14_v26 }
  0xf6   :  { %v98_v28 = vpop.f32.mrb[0].mxu0 }
  0xf7   :  { %v99_v29 = vadd.f32 %v98_v28, %v31_v27  ;;  %v158_v30 = vpop.f32.mrb[1].mxu0 }
  0xf9   :  { %102 = vst [vmem:[%s269_s3] sm:$0xff] %v99_v29 }

</bundles_post_ra>
